<compile_context>
chip_gen: v5e
topology: v5e:2x2
jax: 0.10.0
libtpu: 0.0.40
codegen_flags: <defaults>
</compile_context>

<pallas_src>
import numpy as np
import jax
import jax.numpy as jnp
from jax.experimental import pallas as pl
from jax.experimental.pallas import tpu as pltpu


def _round_up(x, m):
    return ((x + m - 1) // m) * m


def _make_mlp_kernel(num_layers):
    """Fused MLP kernel: Linear+ReLU for hidden layers, Linear+Tanh for output."""

    def kernel(*refs):
        x_ref = refs[0]
        out_ref = refs[-1]
        wb_refs = refs[1:-1]  # alternating (W, b) refs, num_layers pairs

        h = x_ref[...]  # (TB, S) f32
        for layer in range(num_layers):
            w = wb_refs[2 * layer][...]       # (in_dim, out_dim)
            b = wb_refs[2 * layer + 1][...]   # (1, out_dim)
            h = jnp.dot(h, w, preferred_element_type=jnp.float32) + b
            if layer < num_layers - 1:
                h = jnp.maximum(h, 0.0)       # ReLU (VPU)
            else:
                h = jnp.tanh(h)               # Tanh output activation (EUP)
        out_ref[...] = h.astype(out_ref.dtype)

    return kernel


def init_dirac_policy_params(key, state_dim, action_dim,
                             num_hidden_layers=2, hidden_dim=256):
    """Build (W, b) pairs matching torch.nn.Linear default init.

    Biases are laid out as (1, out_dim) rows once, host-side, so the kernel
    needs no reshape/broadcast setup per call.
    """
    dims = [state_dim] + [hidden_dim] * num_hidden_layers + [action_dim]
    params = []
    for i in range(len(dims) - 1):
        key, kw, kb = jax.random.split(key, 3)
        bound = 1.0 / np.sqrt(dims[i])
        w = jax.random.uniform(kw, (dims[i], dims[i + 1]), jnp.float32,
                               minval=-bound, maxval=bound)
        b = jax.random.uniform(kb, (1, dims[i + 1]), jnp.float32,
                               minval=-bound, maxval=bound)
        params.append((w, b))
    return params


def dirac_policy_forward(state, params, *, block_batch=512):
    """state: (B, state_dim) f32; params: list of (W (in,out), b (1,out))."""
    state = jnp.asarray(state, jnp.float32)
    B, S = state.shape
    A = params[-1][0].shape[1]
    num_layers = len(params)

    # Batch tile: multiple of 8 sublanes, capped so the double-buffered
    # in/out tiles plus resident weights stay well under scoped VMEM on every
    # generation (v5e 16 MiB default scoped, v7x 64 MiB physical).
    tb = min(block_batch, _round_up(B, 8))
    tb = _round_up(tb, 8)
    Bp = _round_up(B, tb)
    if Bp != B:
        state = jnp.pad(state, ((0, Bp - B), (0, 0)))  # padded rows sliced off below

    # Lane-dense output: pad the last layer's output dim to a multiple of 128
    # (zero columns -> tanh(0)=0 in the padded lanes; sliced off below).
    # perf: in production keep the last-layer weights stored pre-padded so
    # this pad is a no-op instead of a (tiny) per-call XLA op.
    Ap = _round_up(A, 128)
    params_eff = list(params)
    if Ap != A:
        w_last, b_last = params[-1]
        w_last = jnp.pad(w_last, ((0, 0), (0, Ap - A)))
        b_last = jnp.pad(b_last, ((0, 0), (0, Ap - A)))
        params_eff[-1] = (w_last, b_last)

    flat_params = []
    in_specs = [pl.BlockSpec((tb, S), lambda i: (i, 0))]
    for (w, b) in params_eff:
        flat_params.append(w)
        in_specs.append(pl.BlockSpec(w.shape, lambda i: (0, 0)))  # resident weights
        flat_params.append(b)
        in_specs.append(pl.BlockSpec(b.shape, lambda i: (0, 0)))  # resident bias rows

    out = pl.pallas_call(
        _make_mlp_kernel(num_layers),
        out_shape=jax.ShapeDtypeStruct((Bp, Ap), jnp.float32),
        grid_spec=pltpu.PrefetchScalarGridSpec(
            num_scalar_prefetch=0,
            grid=(Bp // tb,),
            in_specs=in_specs,
            out_specs=pl.BlockSpec((tb, Ap), lambda i: (i, 0)),
        ),
        compiler_params=pltpu.CompilerParams(
            dimension_semantics=("parallel",),  # shard batch tiles across TCs (v7x)
        ),
    )(state, *flat_params)

    return out[:B, :A]


def _reference_forward(state, params):
    h = jnp.asarray(state, jnp.float32)
    n = len(params)
    for i, (w, b) in enumerate(params):
        h = h @ w + b
        if i < n - 1:
            h = jnp.maximum(h, 0.0)
        else:
            h = jnp.tanh(h)
    return h


if __name__ == "__main__":
    key = jax.random.PRNGKey(0)
    k_params, k_state = jax.random.split(key)

    # Small demo shapes consistent with DiracPolicy's forward.
    state_dim = 16
    action_dim = 8
    hidden_dim = 32
    num_hidden_layers = 2
    batch = 16

    params = init_dirac_policy_params(
        k_params, state_dim, action_dim,
        num_hidden_layers=num_hidden_layers, hidden_dim=hidden_dim)
    state = jax.random.normal(k_state, (batch, state_dim), dtype=jnp.float32)

    # block_batch=8 -> grid=(2,) so the demo exercises the pipelined batch grid.
    actions = dirac_policy_forward(state, params, block_batch=8)
    actions = jax.block_until_ready(actions)

    ref = _reference_forward(state, params)
    assert actions.shape == (batch, action_dim)
    np.testing.assert_allclose(np.asarray(actions), np.asarray(ref),
                               rtol=1e-5, atol=1e-5)

    print("KERNEL_OK")
</pallas_src>

<mosaic_0001>
module attributes {stable_mosaic.version = 11 : i64} {
  func.func @kernel(%arg0: i32, %arg1: memref<8x16xf32, #tpu.memory_space<vmem>>, %arg2: memref<16x32xf32, #tpu.memory_space<vmem>>, %arg3: memref<1x32xf32, #tpu.memory_space<vmem>>, %arg4: memref<32x32xf32, #tpu.memory_space<vmem>>, %arg5: memref<1x32xf32, #tpu.memory_space<vmem>>, %arg6: memref<32x128xf32, #tpu.memory_space<vmem>>, %arg7: memref<1x128xf32, #tpu.memory_space<vmem>>, %arg8: memref<8x128xf32, #tpu.memory_space<vmem>>) attributes {dimension_semantics = [#tpu.dimension_semantics<parallel>], iteration_bounds = array<i64: 2>, scalar_prefetch = 0 : i64, scratch_operands = 0 : i64, tpu.core_type = #tpu.core_type<tc>, window_params = [{transform_indices = @transform_0, window_bounds = array<i64: 8, 16>}, {pipeline_mode = #tpu.pipeline_mode<synchronous>, transform_indices = @transform_1, window_bounds = array<i64: 16, 32>}, {pipeline_mode = #tpu.pipeline_mode<synchronous>, transform_indices = @transform_2, window_bounds = array<i64: 1, 32>}, {pipeline_mode = #tpu.pipeline_mode<synchronous>, transform_indices = @transform_3, window_bounds = array<i64: 32, 32>}, {pipeline_mode = #tpu.pipeline_mode<synchronous>, transform_indices = @transform_4, window_bounds = array<i64: 1, 32>}, {pipeline_mode = #tpu.pipeline_mode<synchronous>, transform_indices = @transform_5, window_bounds = array<i64: 32, 128>}, {pipeline_mode = #tpu.pipeline_mode<synchronous>, transform_indices = @transform_6, window_bounds = array<i64: 1, 128>}, {transform_indices = @transform_7, window_bounds = array<i64: 8, 128>}]} {
    %c0 = arith.constant 0 : index
    %c0_0 = arith.constant 0 : index
    %0 = vector.load %arg1[%c0, %c0_0] : memref<8x16xf32, #tpu.memory_space<vmem>>, vector<8x16xf32>
    %c0_1 = arith.constant 0 : index
    %c0_2 = arith.constant 0 : index
    %1 = vector.load %arg2[%c0_1, %c0_2] : memref<16x32xf32, #tpu.memory_space<vmem>>, vector<16x32xf32>
    %c0_3 = arith.constant 0 : index
    %c0_4 = arith.constant 0 : index
    %2 = vector.load %arg3[%c0_3, %c0_4] : memref<1x32xf32, #tpu.memory_space<vmem>>, vector<1x32xf32>
    %cst = arith.constant dense<0.000000e+00> : vector<8x32xf32>
    %3 = tpu.matmul %0, %1, %cst {dimension_numbers = #tpu.dot_dimension_numbers<[1], [0], [0], [1], [0, 0, 1, 1], [], []>} : vector<8x16xf32>, vector<16x32xf32>, vector<8x32xf32> -> vector<8x32xf32>
    %4 = vector.broadcast %2 : vector<1x32xf32> to vector<8x32xf32>
    %5 = arith.addf %3, %4 : vector<8x32xf32>
    %cst_5 = arith.constant 0.000000e+00 : f32
    %6 = vector.broadcast %cst_5 : f32 to vector<8x32xf32>
    %7 = arith.maximumf %5, %6 : vector<8x32xf32>
    %c0_6 = arith.constant 0 : index
    %c0_7 = arith.constant 0 : index
    %8 = vector.load %arg4[%c0_6, %c0_7] : memref<32x32xf32, #tpu.memory_space<vmem>>, vector<32x32xf32>
    %c0_8 = arith.constant 0 : index
    %c0_9 = arith.constant 0 : index
    %9 = vector.load %arg5[%c0_8, %c0_9] : memref<1x32xf32, #tpu.memory_space<vmem>>, vector<1x32xf32>
    %cst_10 = arith.constant dense<0.000000e+00> : vector<8x32xf32>
    %10 = tpu.matmul %7, %8, %cst_10 {dimension_numbers = #tpu.dot_dimension_numbers<[1], [0], [0], [1], [0, 0, 1, 1], [], []>} : vector<8x32xf32>, vector<32x32xf32>, vector<8x32xf32> -> vector<8x32xf32>
    %11 = vector.broadcast %9 : vector<1x32xf32> to vector<8x32xf32>
    %12 = arith.addf %10, %11 : vector<8x32xf32>
    %cst_11 = arith.constant 0.000000e+00 : f32
    %13 = vector.broadcast %cst_11 : f32 to vector<8x32xf32>
    %14 = arith.maximumf %12, %13 : vector<8x32xf32>
    %c0_12 = arith.constant 0 : index
    %c0_13 = arith.constant 0 : index
    %15 = vector.load %arg6[%c0_12, %c0_13] : memref<32x128xf32, #tpu.memory_space<vmem>>, vector<32x128xf32>
    %c0_14 = arith.constant 0 : index
    %c0_15 = arith.constant 0 : index
    %16 = vector.load %arg7[%c0_14, %c0_15] : memref<1x128xf32, #tpu.memory_space<vmem>>, vector<1x128xf32>
    %cst_16 = arith.constant dense<0.000000e+00> : vector<8x128xf32>
    %17 = tpu.matmul %14, %15, %cst_16 {dimension_numbers = #tpu.dot_dimension_numbers<[1], [0], [0], [1], [0, 0, 1, 1], [], []>} : vector<8x32xf32>, vector<32x128xf32>, vector<8x128xf32> -> vector<8x128xf32>
    %18 = vector.broadcast %16 : vector<1x128xf32> to vector<8x128xf32>
    %19 = arith.addf %17, %18 : vector<8x128xf32>
    %20 = math.tanh %19 : vector<8x128xf32>
    %c0_17 = arith.constant 0 : index
    %c0_18 = arith.constant 0 : index
    %21 = vector.load %arg8[%c0_17, %c0_18] : memref<8x128xf32, #tpu.memory_space<vmem>>, vector<8x128xf32>
    tpu.vector_store %arg8[%c0_17, %c0_18], %20 {strides = array<i32>} : memref<8x128xf32, #tpu.memory_space<vmem>>, vector<8x128xf32>,
    return
  }
  func.func @transform_0(%arg0: i32) -> (i32, i32) {
    %c0_i32 = arith.constant 0 : i32
    %c0_i32_0 = arith.constant 0 : i32
    return %arg0, %c0_i32 : i32, i32
  }
  func.func @transform_1(%arg0: i32) -> (i32, i32) {
    %c0_i32 = arith.constant 0 : i32
    %c0_i32_0 = arith.constant 0 : i32
    %c0_i32_1 = arith.constant 0 : i32
    return %c0_i32, %c0_i32_0 : i32, i32
  }
  func.func @transform_2(%arg0: i32) -> (i32, i32) {
    %c0_i32 = arith.constant 0 : i32
    %c0_i32_0 = arith.constant 0 : i32
    %c0_i32_1 = arith.constant 0 : i32
    return %c0_i32, %c0_i32_0 : i32, i32
  }
  func.func @transform_3(%arg0: i32) -> (i32, i32) {
    %c0_i32 = arith.constant 0 : i32
    %c0_i32_0 = arith.constant 0 : i32
    %c0_i32_1 = arith.constant 0 : i32
    return %c0_i32, %c0_i32_0 : i32, i32
  }
  func.func @transform_4(%arg0: i32) -> (i32, i32) {
    %c0_i32 = arith.constant 0 : i32
    %c0_i32_0 = arith.constant 0 : i32
    %c0_i32_1 = arith.constant 0 : i32
    return %c0_i32, %c0_i32_0 : i32, i32
  }
  func.func @transform_5(%arg0: i32) -> (i32, i32) {
    %c0_i32 = arith.constant 0 : i32
    %c0_i32_0 = arith.constant 0 : i32
    %c0_i32_1 = arith.constant 0 : i32
    return %c0_i32, %c0_i32_0 : i32, i32
  }
  func.func @transform_6(%arg0: i32) -> (i32, i32) {
    %c0_i32 = arith.constant 0 : i32
    %c0_i32_0 = arith.constant 0 : i32
    %c0_i32_1 = arith.constant 0 : i32
    return %c0_i32, %c0_i32_0 : i32, i32
  }
  func.func @transform_7(%arg0: i32) -> (i32, i32) {
    %c0_i32 = arith.constant 0 : i32
    %c0_i32_0 = arith.constant 0 : i32
    return %arg0, %c0_i32 : i32, i32
  }
}

</mosaic_0001>

<bundles_post_ra>
// kernel: tpu_custom_call.1
= control target key start
LH: loop header
LB: loop body
LE: loop exit
PB: predicated region body
PF: predicated region fallthrough
CT: control target
= control target key end

     0   :  { %s1074_s0 = inlined_call_operand.hbm [shape: f32[16,16], index: 0, kind: input, shape index: {}]   ;;  %s1075_s1 = inlined_call_operand.hbm [shape: f32[16,32], index: 1, kind: input, shape index: {}]   ;;  %s1076_s2 = inlined_call_operand.vmem [shape: f32[1,32], index: 2, kind: input, shape index: {}]   ;;  %s1077_s3 = inlined_call_operand.hbm [shape: f32[32,32], index: 3, kind: input, shape index: {}]   ;;  %s1078_s4 = inlined_call_operand.vmem [shape: f32[1,32], index: 4, kind: input, shape index: {}]   ;;  %s1079_s5 = inlined_call_operand.hbm [shape: f32[32,128], index: 5, kind: input, shape index: {}]   ;;  %s1080_s6 = inlined_call_operand.vmem [shape: f32[1,128], index: 6, kind: input, shape index: {}]   ;;  %s1081_s7 = inlined_call_operand.hbm [shape: f32[16,128], index: 7, kind: output, shape index: {}]  }
   0x1   :  { %1082 = sst [smem:[#allocation15_spill]] %s1075_s1 }
   0x2   :  { %12 = vsyncpa [#allocation3], 0 }
   0x3   :  { %14 = vsyncpa [#allocation3 + $0x1], 0 }
   0x4   :  { %15 = vsyncpa [#allocation6], 0 }
   0x5   :  { %16 = vsyncpa [#allocation9], 0 }
   0x6   :  { %17 = vsyncpa [#allocation4], 0 }
   0x7   :  { %19 = vsyncpa [#allocation4 + $0x1], 0  ;;  %s905_s24 = smov 0   ;;  %s907_s25 = smov 0  }
   0x8   :  { %s909_s26 = smov 0   ;;  %s911_s27 = smov 0  }
   0x9 LB: > { %s1083_s1 = sld [smem:[#allocation15_spill]]  ;;  %s929_s8 = sadd.s32 4294967295, %s858_s27   ;;  %s858_s27 = sphi %s911_s27, %s1094_s27   ;;  %s854_s26 = sphi %s909_s26, %s1093_s26   ;;  %s850_s25 = sphi %s907_s25, %s1092_s25   ;;  %s846_s24 = sphi %s905_s24, %s1091_s24  }
   0xa   : > { %p560_p0 = scmp.ge.s32.totalorder %s858_s27, 1  ;;  %p46_p1 = scmp.eq.s32.totalorder %s929_s8, 0 }
   0xb   : > { %p208_p2 = scmp.lt.s32.totalorder %s858_s27, 3  ;;  %s860_s10 = smov [#allocation5]  }
   0xc   : > { %s221_s11 = sshll.u32 %s860_s10, 4  ;;  %s236_s14 = sshll.u32 %s1077_s3, 4  ;;  %s222_s11 = int_to_ptr.vmem [resolvable:$true] %s221_s11  ;;  %s237_s14 = int_to_ptr.hbm [resolvable:$true] %s236_s14 }
   0xd   : > { %p934_p3 = pnand %p560_p0, %p208_p2  ;;  %s253_s18 = sshll.u32 %s1079_s5, 4  ;;  %s254_s18 = int_to_ptr.hbm [resolvable:$true] %s253_s18 }
   0xe   : > { %s861_s19 = smov [#allocation7]   ;;  %s862_s21 = smov 128  }
   0xf   : > { %s219_s30 = sshll.u32 %s1083_s1, 4  ;;  %p596_p4 = pneg %p934_p3  ;;  %s220_s30 = int_to_ptr.hbm [resolvable:$true] %s219_s30 }
  0x10   : > { %s238_s20 = sshll.u32 %s861_s19, 4  ;;  %s863_s22 = smov 8   ;;  %s239_s20 = int_to_ptr.vmem [resolvable:$true] %s238_s20 }
  0x11   : > { %p946_p6 = pnand %p596_p4, %p46_p1  ;;  %s864_s23 = smov [#allocation8]  }
  0x12   : > { %s255_s28 = sshll.u32 %s864_s23, 4  ;;  %s559_s29 = sadd.s32 4294967294, %s858_s27   ;;  %s256_s28 = int_to_ptr.vmem [resolvable:$true] %s255_s28 }
  0x13   : > { %599 = dma.hbm_to_vmem [thread:$0]  (!%p946_p6), %s220_s30, 256, %s222_s11, [#allocation6], %s862_s21, %s862_s21, %s863_s22  }
  0x14   : > { %602 = dma.hbm_to_vmem [thread:$0]  (!%p946_p6), %s237_s14, 512, %s239_s20, [#allocation6], %s862_s21, %s862_s21, %s863_s22  }
  0x15   : > { %605 = dma.hbm_to_vmem [thread:$0]  (!%p946_p6), %s254_s18, 512, %s256_s28, [#allocation9], %s862_s21, %s862_s21, %s863_s22  }
  0x16   : > { %s961_s10 = sadd.s32 1, %s858_s27   ;;  %s32_s12 = sadd.s32 1, %s854_s26 }
  0x17   : > { %s29_s30 = ssub.s32 %s858_s27, %s961_s10  ;;  %p39_p7 = scmp.ne.s32.totalorder %s854_s26, %s850_s25 }
  0x18   : > { %p30_p8 = scmp.eq.s32.totalorder %s29_s30, 0  ;;  %p40_p9 = scmp.eq.s32.totalorder %s858_s27, 0 }
  0x19   : > { %p45_p10 = scmp.ne.s32.totalorder %s850_s25, %s846_s24  ;;  %p195_p11 = scmp.eq.s32.totalorder %s929_s8, 1 }
  0x1a   : > { %s973_s11 = scalar_select %p30_p8, %s854_s26, %s32_s12  }
  0x1b   : > { %p977_p12 = por %p46_p1, %p45_p10  ;;  %p981_p13 = por %p195_p11, %p39_p7 }
  0x1c   : > { %p201_p0 = scmp.eq.s32.totalorder %s559_s29, 1  ;;  %p41_p2 = por %p40_p9, %p39_p7 }
  0x1d   : > { %s272_s15 = sand.u32 1, %s854_s26   ;;  %p617_p6 = scmp.lt.s32.totalorder %s858_s27, 2 }
  0x1e   : > { %p986_p4 = por %p201_p0, %p45_p10  ;;  %s565_s17 = sshll.u32 %s272_s15, 3 }
  0x1f   : > { %s566_s18 = sshll.u32 %s858_s27, 3  ;;  %s276_s23 = scalar_lea.vmem [#allocation2], %s565_s17 }
  0x20   : > { %s280_s21 = scalar_lea.hbm %s1074_s0, %s566_s18  ;;  %s284_s28 = sshll.u32 %s276_s23, 4  ;;  %s285_s28 = int_to_ptr.vmem [resolvable:$true] %s284_s28 }
  0x21   : > { %s282_s22 = sshll.u32 %s280_s21, 4  ;;  %p995_p8 = pnand %p617_p6, %p41_p2  ;;  %s283_s22 = int_to_ptr.hbm [resolvable:$true] %s282_s22 }
  0x22   : > { %s273_s12 = scalar_lea.sflag [#allocation3], %s272_s15  ;;  %s754_s30 = sshra.s32 %s283_s22, 4  ;;  %s755_s30 = int_to_ptr.hbm [resolvable:$true] %s754_s30 }
  0x23   : > { %s756_s1 = scalar_lea.hbm %s755_s30, 8  ;;  %p758_p9 = pneg %p995_p8 }
  0x24   : > { %p757_p7 = scmp.ne.s32.totalorder %s755_s30, %s756_s1  ;;  %s761_s17 = scalar_lea.hbm %s1074_s0, 16 }
  0x25   : > { %p762_p0 = scmp.lt.s32.totalorder %s755_s30, %s1074_s0  ;;  %p763_p2 = scmp.lt.s32.totalorder %s761_s17, %s756_s1 }
  0x26   : > { %p759_p10 = pnand %p758_p9, %p757_p7 }
  0x27   : > { %p764_p6 = por %p763_p2, %p762_p0 }
  0x28   : > { %p760_p11 = pneg %p759_p10 }
  0x2a   : > { %p765_p5 = pnand %p764_p6, %p760_p11 }
  0x2c   : > { %768 = shalt.err (!%p765_p5)
}
  0x2d   : > { %609 = dma.hbm_to_vmem [thread:$0]  (!%p995_p8), %s283_s22, 128, %s285_s28, %s273_s12  }
  0x2e   : > { %293 = sbr.rel (%p934_p3) target bundleno = 464 (0x1d0), region = 48  ;;  %s1012_s15 = sand.u32 (!%p934_p3), 1, %s850_s25  }
  0x2f   : > { %s568_s23 = sshll.u32 (!%p934_p3), %s1012_s15, 3  ;;  %s296_s18 = scalar_lea.sflag (!%p934_p3), [#allocation3], %s1012_s15 }
  0x30   : > { %s299_s1 = scalar_lea.vmem (!%p934_p3), [#allocation2], %s568_s23 }
  0x33   : > { %829 = dma.done.wait (%p977_p12), %s296_s18, 128  }
  0x34   : > { %831 = vsyncadd (%p977_p12), %s296_s18, 4294967168 }
  0x35   : > { %833 = dma.done.wait (%p46_p1), [#allocation6], 768  }
  0x36   : > { %835 = vsyncadd (%p46_p1), [#allocation6], 4294966528 }
  0x37   : > { %837 = dma.done.wait (%p46_p1), [#allocation9], 512  }
  0x38   : > { %839 = vsyncadd (%p46_p1), [#allocation9], 4294966784  ;;  %v348_v0 = vld [vmem:[#allocation5 + $0x8] sm:$0xff]  ;;  %v347_v1 = vld [vmem:[#allocation5] sm:$0xff]  ;;  %vm353_vm0 = vcmask 130048   ;;  %vm386_vm1 = vcmask 261120  }
  0x39   : > { %371 = vmatpush.msra.mxu0 %v348_v0  ;;  %v346_v2 = vld [vmem:[%s299_s1] sm:$0xff]  ;;  %v381_v3 = vld [vmem:[#allocation7 + $0x18] sm:$0xff]  ;;  %v380_v4 = vld [vmem:[#allocation7 + $0x10] sm:$0xff]  ;;  %s577_s30 = sshll.u32 %s929_s8, 3  ;;  %s345_s21 = scalar_lea.vmem [#allocation10], %s568_s23 }
  0x3a   : > { %402 = vmatpush.msra.mxu1 %v381_v3  ;;  %v379_v5 = vld [vmem:[#allocation7 + $0x8] sm:$0xff]  ;;  %v378_v6 = vld [vmem:[#allocation7] sm:$0xff]  ;;  %v414_v7 = vld [vmem:[#allocation8 + $0x18] sm:$0xff]  ;;  %s455_s20 = scalar_lea.hbm %s1081_s7, %s577_s30  ;;  %s457_s18 = sshll.u32 %s345_s21, 4  ;;  %s458_s18 = int_to_ptr.vmem [resolvable:$true] %s457_s18 }
  0x3b   : > { %372 = vmatpush.msra.mxu0 %v347_v1  ;;  %434 = vmatpush.msra.mxu2 %v414_v7  ;;  %v659_v8 = vld [vmem:[%s1076_s2] ss:$0 sm:$0xff]  ;;  %v413_v12 = vld [vmem:[#allocation8 + $0x10] sm:$0xff]  ;;  %v412_v13 = vld [vmem:[#allocation8 + $0x8] sm:$0xff]  ;;  %s459_s1 = sshll.u32 %s455_s20, 4  ;;  %s445_s9 = scalar_lea.sflag [#allocation4], %s1012_s15  ;;  %s460_s1 = int_to_ptr.hbm [resolvable:$true] %s459_s1 }
  0x3c   : > { %573 = vmatmul.msk.f32.vlgmr.msra.gmra.mxu0 %vm353_vm0, %v346_v2  ;;  %403 = vmatpush.msra.mxu1 %v380_v4  ;;  %v411_v14 = vld [vmem:[#allocation8] sm:$0xff]  ;;  %s798_s13 = sshra.s32 %s460_s1, 4  ;;  %s804_s29 = scalar_lea.hbm %s1081_s7, 16  ;;  %s799_s13 = int_to_ptr.hbm [resolvable:$true] %s798_s13 }
  0x3d   : > { %435 = vmatpush.msra.mxu2 %v413_v12  ;;  %v660_v15 = vld [vmem:[%s1078_s4] ss:$0 sm:$0xff]  ;;  %s800_s8 = scalar_lea.hbm %s799_s13, 8  ;;  %p805_p12 = scmp.lt.s32.totalorder %s799_s13, %s1081_s7 }
  0x3e   : > { %404 = vmatpush.msra.mxu1 %v379_v5  ;;  %v661_v19 = vld [vmem:[%s1080_s6] ss:$0 sm:$0xff]  ;;  %p801_p1 = scmp.ne.s32.totalorder %s799_s13, %s800_s8  ;;  %p806_p8 = scmp.lt.s32.totalorder %s804_s29, %s800_s8 }
  0x3f   : > { %436 = vmatpush.msra.mxu2 %v412_v13 }
  0x40   : > { %405 = vmatpush.msra.mxu1 %v378_v6  ;;  %p802_p3 = pnand %p801_p1, %p981_p13  ;;  %p807_p7 = por %p806_p8, %p805_p12 }
  0x41   : > { %437 = vmatpush.msra.mxu2 %v411_v14 }
  0x42   : > { %p803_p5 = pneg %p802_p3 }
  0x44   : > { %p808_p9 = pnand %p807_p7, %p803_p5 }
  0xb9   : > { %v374_v9 = vpop.f32.mrf.mxu0 }
  0xba   : > { %v375_v10 = vadd.f32 %v659_v8, %v374_v9 }
  0xbc   : > { %v377_v11 = vmax.f32 %v375_v10, 0.0 }
  0xbe   : > { %574 = vmatmul.msk.f32.vlgmr.msra.gmra.mxu1 %vm386_vm1, %v377_v11 }
 0x13b   : > { %v407_v16 = vpop.f32.mrf.mxu1 }
 0x13c   : > { %v408_v17 = vadd.f32 %v660_v15, %v407_v16 }
 0x13e   : > { %v410_v18 = vmax.f32 %v408_v17, 0.0 }
 0x140   : > { %575 = vmatmul.msk.f32.vlgmr.msra.gmra.mxu2 %vm386_vm1, %v410_v18 }
 0x1c3   : > { %v439_v20 = vpop.f32.mrf.mxu2 }
 0x1c4   : > { %v440_v21 = vadd.f32 %v661_v19, %v439_v20 }
 0x1c6   : > { %662 = vtanh.f32 %v440_v21 }
 0x1cc   : > { %v663_v22 = vpop.eup %662 }
 0x1cd   : > { %443 = vst [vmem:[%s345_s21] sm:$0xff] %v663_v22 }
 0x1ce   : > { %811 = shalt.err (!%p808_p9)
}
 0x1cf   : > { %594 = dma.vmem_to_hbm [thread:$0]  (%p981_p13), %s458_s18, 128, %s460_s1, %s445_s9  }
 0x1d0 PF: > { %s471_s15 = sand.u32 1, %s846_s24   ;;  %p1090_p10 = scmp.ge.s32.totalorder %s858_s27, 2 }
 0x1d1   : > { %s472_s30 = scalar_lea.sflag [#allocation4], %s471_s15 }
 0x1d2   : > { %p611_p11 = pnand %p1090_p10, %p986_p4 }
 0x1d4   : > { %p612_p0 = pneg %p611_p11 }
 0x1d6   : > { %841 = dma.done.wait (%p612_p0), %s472_s30, 128  }
 0x1d7   : > { %843 = vsyncadd (%p612_p0), %s472_s30, 4294967168  ;;  %p22_p2 = scmp.ge.s32.totalorder %s961_s10, 4   ;;  %s1091_s24 = smov %s850_s25 }
 0x1d8   : > { %s1092_s25 = smov %s854_s26  ;;  %s1093_s26 = smov %s973_s11 }
 0x1d9   : > { %s1094_s27 = smov %s961_s10  ;;  %24 = sbr.rel (!%p22_p2) target bundleno = 9 (0x9), region = 105 }
 0x1de   :  { %478 = vsyncpa [#allocation3], 1 }
 0x1df   :  { %480 = vsyncpa [#allocation3 + $0x1], 1 }
 0x1e0   :  { %481 = vsyncpa [#allocation6], 1 }
 0x1e1   :  { %482 = vsyncpa [#allocation9], 1 }
 0x1e2   :  { %483 = vsyncpa [#allocation4], 1 }
 0x1e3   :  { %485 = vsyncpa [#allocation4 + $0x1], 1 }

</bundles_post_ra>
